<compile_context>
chip_gen: v6e
topology: v6e:2x2x1
jax: 0.10.0
libtpu: 0.0.40
codegen_flags: <defaults>
</compile_context>

<pallas_src>
import functools
from typing import Tuple

import jax
import jax.numpy as jnp
from jax import lax
from jax.experimental import pallas as pl
from jax.experimental.pallas import tpu as pltpu


def conv_same_padding(in_size: int, kernel: int, stride: int = 1,
                      dilation: int = 1) -> Tuple[int, int]:
    effective_filter_size = (kernel - 1) * dilation + 1
    out_size = (in_size + stride - 1) // stride
    padding_needed = max(0, (out_size - 1) * stride + effective_filter_size - in_size)
    if padding_needed % 2 == 0:
        padding_left = padding_needed // 2
        padding_right = padding_needed // 2
    else:
        padding_left = (padding_needed - 1) // 2
        padding_right = (padding_needed + 1) // 2
    return (padding_left, padding_right)


def _resnet_block_kernel(x_ref, w_ref, shift_ref, o_ref, *,
                         N, H, W, KH, KW, p_t, p_l):
    # x_ref:     (N, Cpad, H*W)  f32   channels (padded to 8) on sublanes, spatial on lanes
    # w_ref:     (Cout, KH*KW*Cpad) bf16  BN-scale folded weights, columns ordered (kh, kw, c)
    # shift_ref: (Cout, 1)       f32   conv_bias*scale + beta - mean*scale
    # o_ref:     (N, Cout, H*W)  f32   lane-dense output (H*W multiple of 128)
    Cpad, HW = x_ref.shape[1], x_ref.shape[2]

    # Per-image flattened-position helpers (int32 -> VPU-safe on every generation).
    lane = lax.broadcasted_iota(jnp.int32, (Cpad, HW), 1)
    if (W & (W - 1)) == 0:
        col = lane & (W - 1)
        row = lane >> (W.bit_length() - 1)
    else:
        col = lane % W
        row = lane // W

    # Hoisted border-validity masks: one per distinct vertical / horizontal offset.
    def _band_mask(idx, d, size):
        m = None
        if d < 0:
            m = idx >= -d
        if d > 0:
            mm = idx < size - d
            m = mm if m is None else m & mm
        return m

    row_masks = [_band_mask(row, kh - p_t, H) for kh in range(KH)]
    col_masks = [_band_mask(col, kw - p_l, W) for kw in range(KW)]

    xs = [x_ref[n] for n in range(N)]          # N loads of (Cpad, HW) f32

    # In-kernel im2col: per tap, one rolled+masked (Cpad, HW) slab per image,
    # lane-concatenated across images, then sublane-concatenated across taps.
    tap_slabs = []
    for kh in range(KH):
        dh = kh - p_t
        for kw in range(KW):
            dw = kw - p_l
            off = dh * W + dw
            rm, cm = row_masks[kh], col_masks[kw]
            mask = rm if cm is None else (cm if rm is None else rm & cm)
            per_img = []
            for xi in xs:
                # sl[c, p] = xi[c, p + off]; lanes that wrapped (image border / batch
                # boundary) are exactly the ZeroPad2d region and get zeroed by `mask`.
                sl = xi if off == 0 else pltpu.roll(xi, shift=(-off) % HW, axis=1)
                if mask is not None:
                    sl = jnp.where(mask, sl, 0.0)   # select in f32 (v5e-safe)
                per_img.append(sl)
            tap_slabs.append(per_img[0] if N == 1
                             else jnp.concatenate(per_img, axis=1))
    # (KH*KW*Cpad, N*HW): pure vreg stacking since Cpad % 8 == 0 and HW % 128 == 0.
    patches = jnp.concatenate(tap_slabs, axis=0)

    # One bf16 MXU matmul with f32 accumulation; K = KH*KW*Cpad (= 72 here) <= 128.
    acc = jnp.dot(w_ref[...], patches.astype(jnp.bfloat16),
                  preferred_element_type=jnp.float32)        # (Cout, N*HW) f32
    out = acc + shift_ref[...]                               # fused conv-bias + BN shift
    for n in range(N):                                       # 128-aligned lane slices
        o_ref[n, :, :] = out[:, n * HW:(n + 1) * HW].astype(o_ref.dtype)


def resnet_block_forward(x_nchw, w_oihw, bias, gamma, beta, running_mean,
                         running_var, eps=1e-5):
    """Forward pass equivalent to the PyTorch resnet_block (stride=1, eval-mode BN)."""
    N, C, H, W = x_nchw.shape
    Cout, Cin, KH, KW = w_oihw.shape
    assert Cin == C
    HW = H * W
    assert HW % 128 == 0, "lane-dense layout requires H*W to be a multiple of 128"
    # TODO(synk): pad the spatial axis to a multiple of 128 for general H*W.

    # "same" padding, computed exactly like the PyTorch module (stride = 1).
    p_l, p_r = conv_same_padding(W, KW, 1)
    p_t, p_b = conv_same_padding(H, KH, 1)
    assert p_t + p_b == KH - 1 and p_l + p_r == KW - 1  # stride-1 "same" invariant

    # Pad channels to the f32 sublane packing factor so im2col pieces are vreg-aligned.
    PACK = 8
    Cpad = ((C + PACK - 1) // PACK) * PACK
    Kdim = KH * KW * Cpad

    # Fold BatchNorm (inference) into the conv: scale into the weights (then bf16 for
    # the MXU) and (conv_bias*scale + bn_shift) into one per-channel f32 shift.
    scale = (gamma / jnp.sqrt(running_var + eps)).astype(jnp.float32)         # (Cout,)
    w_scaled = w_oihw.astype(jnp.float32) * scale[:, None, None, None]        # (Cout,C,KH,KW)
    if Cpad != C:
        w_scaled = jnp.pad(w_scaled, ((0, 0), (0, Cpad - C), (0, 0), (0, 0)))
    # Column order must match the in-kernel patch-row order: (kh, kw, c).
    w_mat = jnp.transpose(w_scaled, (0, 2, 3, 1)).reshape(Cout, Kdim).astype(jnp.bfloat16)
    shift = (bias.astype(jnp.float32) * scale
             + beta.astype(jnp.float32)
             - running_mean.astype(jnp.float32) * scale).reshape(Cout, 1)

    # Contiguous reshape NCHW -> (N, C, H*W) plus a cheap zero-pad of the channel axis.
    x_flat = x_nchw.astype(jnp.float32).reshape(N, C, HW)
    if Cpad != C:
        x_flat = jnp.pad(x_flat, ((0, 0), (0, Cpad - C), (0, 0)))

    kernel = functools.partial(_resnet_block_kernel, N=N, H=H, W=W, KH=KH, KW=KW,
                               p_t=p_t, p_l=p_l)

    out_flat = pl.pallas_call(
        kernel,
        out_shape=jax.ShapeDtypeStruct((N, Cout, HW), jnp.float32),
        grid_spec=pltpu.PrefetchScalarGridSpec(
            num_scalar_prefetch=0,
            grid=(1,),                       # whole batch in one step / one matmul
            in_specs=[
                pl.BlockSpec((N, Cpad, HW), lambda i: (0, 0, 0)),
                pl.BlockSpec((Cout, Kdim), lambda i: (0, 0)),
                pl.BlockSpec((Cout, 1), lambda i: (0, 0)),
            ],
            out_specs=pl.BlockSpec((N, Cout, HW), lambda i: (0, 0, 0)),
        ),
        compiler_params=pltpu.CompilerParams(
            dimension_semantics=("arbitrary",),   # single step; no megacore split needed
            vmem_limit_bytes=32 * 1024 * 1024),
        cost_estimate=pl.CostEstimate(
            flops=2 * Cout * Kdim * N * HW,
            transcendentals=0,
            bytes_accessed=(x_flat.size * 4 + w_mat.size * 2
                            + shift.size * 4 + N * Cout * HW * 4)),
    )(x_flat, w_mat, shift)

    # Free contiguous reshape back to NCHW to match the PyTorch output convention.
    return out_flat.reshape(N, Cout, H, W)


def _reference_forward(x_nchw, w_oihw, bias, gamma, beta, mean, var, eps=1e-5,
                       mxu_dtype=jnp.float32):
    """Pure-JAX reference (pad + conv + BatchNorm2d eval + Identity).

    `mxu_dtype=jnp.bfloat16` reproduces the kernel's bf16 MXU-operand quantization
    (cast operands to bf16, accumulate in f32) for a tight numerical check.
    """
    N, C, H, W = x_nchw.shape
    Cout, _, KH, KW = w_oihw.shape
    p_l, p_r = conv_same_padding(W, KW, 1)
    p_t, p_b = conv_same_padding(H, KH, 1)
    scale = gamma / jnp.sqrt(var + eps)
    w_folded = w_oihw.astype(jnp.float32) * scale[:, None, None, None]
    shift = bias * scale + beta - mean * scale
    xq = x_nchw.astype(mxu_dtype).astype(jnp.float32)
    wq = w_folded.astype(mxu_dtype).astype(jnp.float32)
    out = lax.conv_general_dilated(
        xq, wq, window_strides=(1, 1),
        padding=((p_t, p_b), (p_l, p_r)),
        dimension_numbers=('NCHW', 'OIHW', 'NCHW'))
    return out + shift.reshape(1, Cout, 1, 1)


if __name__ == "__main__":
    # Small shapes consistent with the module: input_size = (C=4, H=16, W=16),
    # num_filters = 8, kernel_size = 3, strides = 1, activation = Identity.
    N, C, H, W = 2, 4, 16, 16
    Cout, K = 8, 3

    key = jax.random.PRNGKey(0)
    kx, kw, kb, kg, kbe, km, kv = jax.random.split(key, 7)

    x = jax.random.normal(kx, (N, C, H, W), dtype=jnp.float32)
    # Conv2d parameters (deterministic synthetic init).
    w = jax.random.normal(kw, (Cout, C, K, K), dtype=jnp.float32) * 0.1
    b = jax.random.normal(kb, (Cout,), dtype=jnp.float32) * 0.1
    # BatchNorm2d (inference) parameters.
    gamma = 1.0 + 0.1 * jax.random.normal(kg, (Cout,), dtype=jnp.float32)
    beta = 0.1 * jax.random.normal(kbe, (Cout,), dtype=jnp.float32)
    running_mean = 0.1 * jax.random.normal(km, (Cout,), dtype=jnp.float32)
    running_var = 1.0 + 0.1 * jax.nn.softplus(
        jax.random.normal(kv, (Cout,), dtype=jnp.float32))

    out = resnet_block_forward(x, w, b, gamma, beta, running_mean, running_var)
    out = jax.block_until_ready(out)
    assert out.shape == (N, Cout, H, W)

    # Tight check against a reference using the same bf16-quantized MXU operands.
    ref_q = _reference_forward(x, w, b, gamma, beta, running_mean, running_var,
                               mxu_dtype=jnp.bfloat16)
    assert jnp.allclose(out, ref_q, atol=1e-3, rtol=1e-3), \
        "mismatch vs bf16-operand reference"
    # Loose sanity check against the exact f32 module semantics (bf16 rounding only).
    ref_f32 = _reference_forward(x, w, b, gamma, beta, running_mean, running_var,
                                 mxu_dtype=jnp.float32)
    assert jnp.allclose(out, ref_f32, atol=5e-2, rtol=5e-2), \
        "mismatch vs f32 reference"

    print("KERNEL_OK")
</pallas_src>

<mosaic_0001>
module attributes {stable_mosaic.version = 11 : i64} {
  func.func @_resnet_block_kernel(%arg0: i32, %arg1: memref<2x8x256xf32, #tpu.memory_space<vmem>>, %arg2: memref<8x72xbf16, #tpu.memory_space<vmem>>, %arg3: memref<8x1xf32, #tpu.memory_space<vmem>>, %arg4: memref<2x8x256xf32, #tpu.memory_space<vmem>>) attributes {dimension_semantics = [#tpu.dimension_semantics<arbitrary>], iteration_bounds = array<i64: 1>, scalar_prefetch = 0 : i64, scratch_operands = 0 : i64, tpu.core_type = #tpu.core_type<tc>, window_params = [{pipeline_mode = #tpu.pipeline_mode<synchronous>, transform_indices = @transform_0, window_bounds = array<i64: 2, 8, 256>}, {pipeline_mode = #tpu.pipeline_mode<synchronous>, transform_indices = @transform_1, window_bounds = array<i64: 8, 72>}, {pipeline_mode = #tpu.pipeline_mode<synchronous>, transform_indices = @transform_2, window_bounds = array<i64: 8, 1>}, {pipeline_mode = #tpu.pipeline_mode<synchronous>, transform_indices = @transform_3, window_bounds = array<i64: 2, 8, 256>}]} {
    %0 = tpu.iota {dimensions = array<i32: 1>} : vector<8x256xi32>
    %c15_i32 = arith.constant 15 : i32
    %1 = vector.broadcast %c15_i32 : i32 to vector<8x256xi32>
    %2 = arith.andi %0, %1 : vector<8x256xi32>
    %c4_i32 = arith.constant 4 : i32
    %3 = vector.broadcast %c4_i32 : i32 to vector<8x256xi32>
    %4 = arith.shrsi %0, %3 : vector<8x256xi32>
    %c1_i32 = arith.constant 1 : i32
    %5 = vector.broadcast %c1_i32 : i32 to vector<8x256xi32>
    %6 = arith.cmpi sge, %4, %5 : vector<8x256xi32>
    %c15_i32_0 = arith.constant 15 : i32
    %7 = vector.broadcast %c15_i32_0 : i32 to vector<8x256xi32>
    %8 = arith.cmpi slt, %4, %7 : vector<8x256xi32>
    %c1_i32_1 = arith.constant 1 : i32
    %9 = vector.broadcast %c1_i32_1 : i32 to vector<8x256xi32>
    %10 = arith.cmpi sge, %2, %9 : vector<8x256xi32>
    %c15_i32_2 = arith.constant 15 : i32
    %11 = vector.broadcast %c15_i32_2 : i32 to vector<8x256xi32>
    %12 = arith.cmpi slt, %2, %11 : vector<8x256xi32>
    %c0 = arith.constant 0 : index
    %c0_3 = arith.constant 0 : index
    %c0_4 = arith.constant 0 : index
    %13 = vector.load %arg1[%c0, %c0_3, %c0_4] : memref<2x8x256xf32, #tpu.memory_space<vmem>>, vector<1x8x256xf32>
    %14 = vector.shape_cast %13 : vector<1x8x256xf32> to vector<8x256xf32>
    %c1 = arith.constant 1 : index
    %c0_5 = arith.constant 0 : index
    %c0_6 = arith.constant 0 : index
    %15 = vector.load %arg1[%c1, %c0_5, %c0_6] : memref<2x8x256xf32, #tpu.memory_space<vmem>>, vector<1x8x256xf32>
    %16 = vector.shape_cast %15 : vector<1x8x256xf32> to vector<8x256xf32>
    %17 = arith.andi %6, %10 : vector<8x256xi1>
    %c17_i32 = arith.constant 17 : i32
    %18 = tpu.dynamic_rotate %14 by %c17_i32 dim 1 : vector<8x256xf32>, i32 -> vector<8x256xf32>
    %cst = arith.constant 0.000000e+00 : f32
    %19 = vector.broadcast %cst : f32 to vector<8x256xf32>
    %20 = arith.select %17, %18, %19 : vector<8x256xi1>, vector<8x256xf32>
    %c17_i32_7 = arith.constant 17 : i32
    %21 = tpu.dynamic_rotate %16 by %c17_i32_7 dim 1 : vector<8x256xf32>, i32 -> vector<8x256xf32>
    %cst_8 = arith.constant 0.000000e+00 : f32
    %22 = vector.broadcast %cst_8 : f32 to vector<8x256xf32>
    %23 = arith.select %17, %21, %22 : vector<8x256xi1>, vector<8x256xf32>
    %24 = tpu.concatenate %20, %23 in 1 : vector<8x256xf32>, vector<8x256xf32> -> vector<8x512xf32>
    %c16_i32 = arith.constant 16 : i32
    %25 = tpu.dynamic_rotate %14 by %c16_i32 dim 1 : vector<8x256xf32>, i32 -> vector<8x256xf32>
    %cst_9 = arith.constant 0.000000e+00 : f32
    %26 = vector.broadcast %cst_9 : f32 to vector<8x256xf32>
    %27 = arith.select %6, %25, %26 : vector<8x256xi1>, vector<8x256xf32>
    %c16_i32_10 = arith.constant 16 : i32
    %28 = tpu.dynamic_rotate %16 by %c16_i32_10 dim 1 : vector<8x256xf32>, i32 -> vector<8x256xf32>
    %cst_11 = arith.constant 0.000000e+00 : f32
    %29 = vector.broadcast %cst_11 : f32 to vector<8x256xf32>
    %30 = arith.select %6, %28, %29 : vector<8x256xi1>, vector<8x256xf32>
    %31 = tpu.concatenate %27, %30 in 1 : vector<8x256xf32>, vector<8x256xf32> -> vector<8x512xf32>
    %32 = arith.andi %6, %12 : vector<8x256xi1>
    %c15_i32_12 = arith.constant 15 : i32
    %33 = tpu.dynamic_rotate %14 by %c15_i32_12 dim 1 : vector<8x256xf32>, i32 -> vector<8x256xf32>
    %cst_13 = arith.constant 0.000000e+00 : f32
    %34 = vector.broadcast %cst_13 : f32 to vector<8x256xf32>
    %35 = arith.select %32, %33, %34 : vector<8x256xi1>, vector<8x256xf32>
    %c15_i32_14 = arith.constant 15 : i32
    %36 = tpu.dynamic_rotate %16 by %c15_i32_14 dim 1 : vector<8x256xf32>, i32 -> vector<8x256xf32>
    %cst_15 = arith.constant 0.000000e+00 : f32
    %37 = vector.broadcast %cst_15 : f32 to vector<8x256xf32>
    %38 = arith.select %32, %36, %37 : vector<8x256xi1>, vector<8x256xf32>
    %39 = tpu.concatenate %35, %38 in 1 : vector<8x256xf32>, vector<8x256xf32> -> vector<8x512xf32>
    %c1_i32_16 = arith.constant 1 : i32
    %40 = tpu.dynamic_rotate %14 by %c1_i32_16 dim 1 : vector<8x256xf32>, i32 -> vector<8x256xf32>
    %cst_17 = arith.constant 0.000000e+00 : f32
    %41 = vector.broadcast %cst_17 : f32 to vector<8x256xf32>
    %42 = arith.select %10, %40, %41 : vector<8x256xi1>, vector<8x256xf32>
    %c1_i32_18 = arith.constant 1 : i32
    %43 = tpu.dynamic_rotate %16 by %c1_i32_18 dim 1 : vector<8x256xf32>, i32 -> vector<8x256xf32>
    %cst_19 = arith.constant 0.000000e+00 : f32
    %44 = vector.broadcast %cst_19 : f32 to vector<8x256xf32>
    %45 = arith.select %10, %43, %44 : vector<8x256xi1>, vector<8x256xf32>
    %46 = tpu.concatenate %42, %45 in 1 : vector<8x256xf32>, vector<8x256xf32> -> vector<8x512xf32>
    %47 = tpu.concatenate %14, %16 in 1 : vector<8x256xf32>, vector<8x256xf32> -> vector<8x512xf32>
    %c255_i32 = arith.constant 255 : i32
    %48 = tpu.dynamic_rotate %14 by %c255_i32 dim 1 : vector<8x256xf32>, i32 -> vector<8x256xf32>
    %cst_20 = arith.constant 0.000000e+00 : f32
    %49 = vector.broadcast %cst_20 : f32 to vector<8x256xf32>
    %50 = arith.select %12, %48, %49 : vector<8x256xi1>, vector<8x256xf32>
    %c255_i32_21 = arith.constant 255 : i32
    %51 = tpu.dynamic_rotate %16 by %c255_i32_21 dim 1 : vector<8x256xf32>, i32 -> vector<8x256xf32>
    %cst_22 = arith.constant 0.000000e+00 : f32
    %52 = vector.broadcast %cst_22 : f32 to vector<8x256xf32>
    %53 = arith.select %12, %51, %52 : vector<8x256xi1>, vector<8x256xf32>
    %54 = tpu.concatenate %50, %53 in 1 : vector<8x256xf32>, vector<8x256xf32> -> vector<8x512xf32>
    %55 = arith.andi %8, %10 : vector<8x256xi1>
    %c241_i32 = arith.constant 241 : i32
    %56 = tpu.dynamic_rotate %14 by %c241_i32 dim 1 : vector<8x256xf32>, i32 -> vector<8x256xf32>
    %cst_23 = arith.constant 0.000000e+00 : f32
    %57 = vector.broadcast %cst_23 : f32 to vector<8x256xf32>
    %58 = arith.select %55, %56, %57 : vector<8x256xi1>, vector<8x256xf32>
    %c241_i32_24 = arith.constant 241 : i32
    %59 = tpu.dynamic_rotate %16 by %c241_i32_24 dim 1 : vector<8x256xf32>, i32 -> vector<8x256xf32>
    %cst_25 = arith.constant 0.000000e+00 : f32
    %60 = vector.broadcast %cst_25 : f32 to vector<8x256xf32>
    %61 = arith.select %55, %59, %60 : vector<8x256xi1>, vector<8x256xf32>
    %62 = tpu.concatenate %58, %61 in 1 : vector<8x256xf32>, vector<8x256xf32> -> vector<8x512xf32>
    %c240_i32 = arith.constant 240 : i32
    %63 = tpu.dynamic_rotate %14 by %c240_i32 dim 1 : vector<8x256xf32>, i32 -> vector<8x256xf32>
    %cst_26 = arith.constant 0.000000e+00 : f32
    %64 = vector.broadcast %cst_26 : f32 to vector<8x256xf32>
    %65 = arith.select %8, %63, %64 : vector<8x256xi1>, vector<8x256xf32>
    %c240_i32_27 = arith.constant 240 : i32
    %66 = tpu.dynamic_rotate %16 by %c240_i32_27 dim 1 : vector<8x256xf32>, i32 -> vector<8x256xf32>
    %cst_28 = arith.constant 0.000000e+00 : f32
    %67 = vector.broadcast %cst_28 : f32 to vector<8x256xf32>
    %68 = arith.select %8, %66, %67 : vector<8x256xi1>, vector<8x256xf32>
    %69 = tpu.concatenate %65, %68 in 1 : vector<8x256xf32>, vector<8x256xf32> -> vector<8x512xf32>
    %70 = arith.andi %8, %12 : vector<8x256xi1>
    %c239_i32 = arith.constant 239 : i32
    %71 = tpu.dynamic_rotate %14 by %c239_i32 dim 1 : vector<8x256xf32>, i32 -> vector<8x256xf32>
    %cst_29 = arith.constant 0.000000e+00 : f32
    %72 = vector.broadcast %cst_29 : f32 to vector<8x256xf32>
    %73 = arith.select %70, %71, %72 : vector<8x256xi1>, vector<8x256xf32>
    %c239_i32_30 = arith.constant 239 : i32
    %74 = tpu.dynamic_rotate %16 by %c239_i32_30 dim 1 : vector<8x256xf32>, i32 -> vector<8x256xf32>
    %cst_31 = arith.constant 0.000000e+00 : f32
    %75 = vector.broadcast %cst_31 : f32 to vector<8x256xf32>
    %76 = arith.select %70, %74, %75 : vector<8x256xi1>, vector<8x256xf32>
    %77 = tpu.concatenate %73, %76 in 1 : vector<8x256xf32>, vector<8x256xf32> -> vector<8x512xf32>
    %78 = tpu.concatenate %24, %31, %39, %46, %47, %54, %62, %69, %77 in 0 : vector<8x512xf32>, vector<8x512xf32>, vector<8x512xf32>, vector<8x512xf32>, vector<8x512xf32>, vector<8x512xf32>, vector<8x512xf32>, vector<8x512xf32>, vector<8x512xf32> -> vector<72x512xf32>
    %c0_32 = arith.constant 0 : index
    %c0_33 = arith.constant 0 : index
    %79 = vector.load %arg2[%c0_32, %c0_33] : memref<8x72xbf16, #tpu.memory_space<vmem>>, vector<8x72xbf16>
    %80 = arith.truncf %78 : vector<72x512xf32> to vector<72x512xbf16>
    %cst_34 = arith.constant dense<0.000000e+00> : vector<8x512xf32>
    %81 = tpu.matmul %79, %80, %cst_34 {dimension_numbers = #tpu.dot_dimension_numbers<[1], [0], [0], [1], [0, 0, 1, 1], [], []>} : vector<8x72xbf16>, vector<72x512xbf16>, vector<8x512xf32> -> vector<8x512xf32>
    %c0_35 = arith.constant 0 : index
    %c0_36 = arith.constant 0 : index
    %82 = vector.load %arg3[%c0_35, %c0_36] : memref<8x1xf32, #tpu.memory_space<vmem>>, vector<8x1xf32>
    %83 = vector.broadcast %82 : vector<8x1xf32> to vector<8x512xf32>
    %84 = arith.addf %81, %83 : vector<8x512xf32>
    %85 = vector.extract_strided_slice %84 {offsets = [0, 0], sizes = [8, 256], strides = [1, 1]} : vector<8x512xf32> to vector<8x256xf32>
    %c0_37 = arith.constant 0 : index
    %c0_38 = arith.constant 0 : index
    %c0_39 = arith.constant 0 : index
    %86 = vector.load %arg4[%c0_37, %c0_38, %c0_39] : memref<2x8x256xf32, #tpu.memory_space<vmem>>, vector<1x8x256xf32>
    %87 = vector.shape_cast %86 : vector<1x8x256xf32> to vector<8x256xf32>
    %88 = vector.shape_cast %85 : vector<8x256xf32> to vector<1x8x256xf32>
    tpu.vector_store %arg4[%c0_37, %c0_38, %c0_39], %88 {strides = array<i32>} : memref<2x8x256xf32, #tpu.memory_space<vmem>>, vector<1x8x256xf32>,
    %89 = vector.extract_strided_slice %84 {offsets = [0, 256], sizes = [8, 256], strides = [1, 1]} : vector<8x512xf32> to vector<8x256xf32>
    %c1_40 = arith.constant 1 : index
    %c0_41 = arith.constant 0 : index
    %c0_42 = arith.constant 0 : index
    %90 = vector.load %arg4[%c1_40, %c0_41, %c0_42] : memref<2x8x256xf32, #tpu.memory_space<vmem>>, vector<1x8x256xf32>
    %91 = vector.shape_cast %90 : vector<1x8x256xf32> to vector<8x256xf32>
    %92 = vector.shape_cast %89 : vector<8x256xf32> to vector<1x8x256xf32>
    tpu.vector_store %arg4[%c1_40, %c0_41, %c0_42], %92 {strides = array<i32>} : memref<2x8x256xf32, #tpu.memory_space<vmem>>, vector<1x8x256xf32>,
    return
  }
  func.func @transform_0(%arg0: i32) -> (i32, i32, i32) {
    %c0_i32 = arith.constant 0 : i32
    %c0_i32_0 = arith.constant 0 : i32
    %c0_i32_1 = arith.constant 0 : i32
    %c0_i32_2 = arith.constant 0 : i32
    return %c0_i32, %c0_i32_0, %c0_i32_1 : i32, i32, i32
  }
  func.func @transform_1(%arg0: i32) -> (i32, i32) {
    %c0_i32 = arith.constant 0 : i32
    %c0_i32_0 = arith.constant 0 : i32
    %c0_i32_1 = arith.constant 0 : i32
    return %c0_i32, %c0_i32_0 : i32, i32
  }
  func.func @transform_2(%arg0: i32) -> (i32, i32) {
    %c0_i32 = arith.constant 0 : i32
    %c0_i32_0 = arith.constant 0 : i32
    %c0_i32_1 = arith.constant 0 : i32
    return %c0_i32, %c0_i32_0 : i32, i32
  }
  func.func @transform_3(%arg0: i32) -> (i32, i32, i32) {
    %c0_i32 = arith.constant 0 : i32
    %c0_i32_0 = arith.constant 0 : i32
    %c0_i32_1 = arith.constant 0 : i32
    %c0_i32_2 = arith.constant 0 : i32
    return %c0_i32, %c0_i32_0, %c0_i32_1 : i32, i32, i32
  }
}

</mosaic_0001>

<bundles_post_ra>
// kernel: tpu_custom_call.1
= control target key start
LH: loop header
LB: loop body
LE: loop exit
PB: predicated region body
PF: predicated region fallthrough
CT: control target
= control target key end

     0   :  { %8 = vsyncpa [#allocation3], 0  ;;  %s835_s0 = inlined_call_operand.hbm [shape: f32[2,8,256], index: 0, kind: input, shape index: {}]   ;;  %s836_s1 = inlined_call_operand.vmem [shape: bf16[8,72], index: 1, kind: input, shape index: {}]   ;;  %s837_s2 = inlined_call_operand.vmem [shape: f32[8,1], index: 2, kind: input, shape index: {}]   ;;  %s838_s3 = inlined_call_operand.hbm [shape: f32[2,8,256], index: 3, kind: output, shape index: {}]  }
   0x1   :  { %9 = vsyncpa [#allocation4], 0  ;;  %s532_s12 = smov [#allocation2]  }
   0x2   :  { %s15_s13 = sshll.u32 %s532_s12, 4  ;;  %s16_s13 = int_to_ptr.vmem [resolvable:$true] %s15_s13 }
   0x3   :  { %s496_s14 = scalar_lea.vmem %s16_s13, 512  ;;  %p501_p1 = scmp.lt.s32.totalorder %s16_s13, %s16_s13 }
   0x4   :  { %p497_p0 = scmp.ne.s32.totalorder %s16_s13, %s496_s14  ;;  %p502_p2 = scmp.lt.s32.totalorder %s496_s14, %s496_s14 }
   0x6   :  { %p503_p3 = por %p502_p2, %p501_p1 }
   0x8   :  { %p504_p4 = pnand %p503_p3, %p497_p0 }
   0xa   :  { %507 = shalt.err (!%p504_p4)
}
   0xb   :  { %s533_s15 = smov 256   ;;  %s534_s16 = smov 16  }
   0xc   :  { %21 = dma.hbm_to_vmem [thread:$0]  %s835_s0, 512, %s16_s13, [#allocation3], %s533_s15, %s533_s15, %s534_s16  }
   0xd   :  { %528 = dma.done.wait [#allocation3], 512  }
   0xe   :  { %529 = vsyncadd [#allocation3], 4294966784  ;;  %v571_v0 = vld [vmem:[#allocation2] sm:$0xff]  ;;  %v573_v1 = vld [vmem:[#allocation2 + $0x8] sm:$0xff]  ;;  %s535_s19 = smov 113   ;;  %s536_s20 = smov 111   ;;  %v30_v8 = vlaneseq }
   0xf   :  { %v575_v2 = vld [vmem:[#allocation2 + $0x10] sm:$0xff]  ;;  %v417_v3 = vpack.i.bf16 %v573_v1, %v571_v0  ;;  %v579_v4 = vld [vmem:[#allocation2 + $0x18] sm:$0xff]  ;;  %s537_s0 = smov 112   ;;  %s538_s21 = smov 127   ;;  %v541_v6 = vmov 0   ;;  %v215_v7 = vld [vmem:[%s837_s2] sm:$0xff] }
  0x10   :  { %v422_v5 = vpack.i.bf16 %v579_v4, %v575_v2  ;;  %s539_s22 = smov 15   ;;  %s540_s23 = smov 1   ;;  %270 = vmatprep.mubr.bf16.mxu0 %v541_v6  ;;  %311 = vmatprep.mubr.bf16.mxu1 %v541_v6  ;;  %v588_v9 = vand.u32 127, %v30_v8  ;;  %vm225_vm7 = vcmask 1043456  }
  0x11   :  { %418 = vrot.lane.b32.xlu1 %v417_v3, %s535_s19  ;;  %408 = vrot.lane.b32.xlu0 %v417_v3, %s536_s20  ;;  %s542_s24 = smov 17   ;;  %s544_s28 = smov [#allocation5]  }
  0x12   :  { %487 = vset.pattern.permute.xlu0 %v541_v6  ;;  %v591_v10 = vadd.s32 128, %v588_v9  ;;  %v33_v11 = vand.u32 15, %v588_v9  ;;  %v35_v12 = vshra.s32 %v588_v9, 4  ;;  %vm181_vm4 = vcmp.lt.s32.totalorder %v588_v9, 111  ;;  %s330_s29 = sshll.u32 %s544_s28, 4  ;;  %s331_s29 = int_to_ptr.vmem [resolvable:$true] %s330_s29 }
  0x13   :  { %vm145_vm8 = vcmp.lt.s32.totalorder %v588_v9, 113  ;;  %vm162_vm10 = vcmp.lt.s32.totalorder %v588_v9, 112  ;;  %vm126_vm11 = vcmp.lt.s32.totalorder %v588_v9, 127  ;;  %p513_p6 = scmp.lt.s32.totalorder %s331_s29, %s331_s29 }
  0x14   :  { %v34_v13 = vand.u32 15, %v591_v10  ;;  %v36_v14 = vshra.s32 %v591_v10, 4  ;;  %vm599_vm0 = vcmp.lt.s32.totalorder %v35_v12, 15  ;;  %vm603_vm1 = vcmp.lt.s32.totalorder %v33_v11, 15 }
  0x15   :  { %423 = vrot.lane.b32.xlu1 %v422_v5, %s535_s19  ;;  %413 = vrot.lane.b32.xlu0 %v422_v5, %s536_s20  ;;  %vm175_vm5 = vmand %vm599_vm0, %vm603_vm1  ;;  %vm667_vm13 = vcmp.ge.s32.totalorder %v33_v11, 1 }
  0x16   :  { %vm609_vm2 = vcmp.lt.s32.totalorder %v36_v14, 15  ;;  %vm613_vm3 = vcmp.lt.s32.totalorder %v34_v13, 15  ;;  %vm641_vm9 = vcmp.ge.s32.totalorder %v34_v13, 1  ;;  %vm139_vm15 = vmand %vm599_vm0, %vm667_vm13  ;;  %v194_v13 = vld [vmem:[%s836_s1] sm:$0xf]  ;;  %s508_s1 = scalar_lea.vmem %s331_s29, 512 }
  0x17   :  { %vm176_vm6 = vmand %vm609_vm2, %vm613_vm3  ;;  %p509_p5 = scmp.ne.s32.totalorder %s331_s29, %s508_s1  ;;  %p514_p7 = scmp.lt.s32.totalorder %s508_s1, %s508_s1 }
  0x18   :  { %vm140_vm12 = vmand %vm609_vm2, %vm641_vm9 }
  0x19   :  { %433 = vrot.lane.b32.xlu1 %v422_v5, %s537_s0  ;;  %428 = vrot.lane.b32.xlu0 %v417_v3, %s537_s0  ;;  %vm682_vm14 = vmpackc.low %vm609_vm2, %vm140_vm12  ;;  %p515_p8 = por %p514_p7, %p513_p6 }
  0x1a   :  { %vm706_vm2 = vmpackc.low %vm599_vm0, %vm139_vm15  ;;  %vm731_vm0 = vcmp.ge.s32.totalorder %v36_v14, 1 }
  0x1b   :  { %p516_p9 = pnand %p515_p8, %p509_p5 }
  0x1d   :  { %443 = vrot.lane.b32.xlu1 %v422_v5, %s538_s21  ;;  %438 = vrot.lane.b32.xlu0 %v417_v3, %s538_s21 }
  0x21   :  { %453 = vrot.lane.b32.xlu1 %v422_v5, %s539_s22  ;;  %448 = vrot.lane.b32.xlu0 %v417_v3, %s539_s22 }
  0x25   :  { %463 = vrot.lane.b32.xlu1 %v422_v5, %s540_s23  ;;  %458 = vrot.lane.b32.xlu0 %v417_v3, %s540_s23 }
  0x29   :  { %473 = vrot.lane.b32.xlu1 %v422_v5, %s542_s24  ;;  %468 = vrot.lane.b32.xlu0 %v417_v3, %s542_s24 }
  0x2d   :  { %483 = vrot.lane.b32.xlu1 %v422_v5, %s534_s16  ;;  %478 = vrot.lane.b32.xlu0 %v417_v3, %s534_s16 }
  0x31   :  { %218 = vperm.xlu0 %487, %v215_v7  }
  0x83   :  { %v419_v19 = vpop.permute.xlu1 %418  ;;  %v409_v20 = vpop.permute.xlu0 %408 }
  0x84   :  { %v411_v21 = vunpack.i.h.bf16 %v409_v20  ;;  %v410_v22 = vunpack.i.l.bf16 %v409_v20  ;;  %v421_v32 = vunpack.i.h.bf16 %v419_v19  ;;  %v420_v33 = vunpack.i.l.bf16 %v419_v19 }
  0x86   :  { %v183_v23 = vsel %vm181_vm4, %v411_v21, %v410_v22  ;;  %v182_v24 = vsel %vm181_vm4, %v410_v22, %v411_v21  ;;  %v146_v50 = vsel %vm145_vm8, %v420_v33, %v421_v32  ;;  %v147_v51 = vsel %vm145_vm8, %v421_v32, %v420_v33 }
  0x87   :  { %v424_v25 = vpop.permute.xlu1 %423  ;;  %v414_v26 = vpop.permute.xlu0 %413  ;;  %v185_v27 = vsel %vm176_vm6, %v183_v23, 0.0  ;;  %v184_v28 = vsel %vm175_vm5, %v182_v24, 0.0 }
  0x88   :  { %v416_v30 = vunpack.i.h.bf16 %v414_v26  ;;  %v415_v31 = vunpack.i.l.bf16 %v414_v26  ;;  %v212_v34 = vpack.c.bf16 %v185_v27, %v185_v27  ;;  %v211_v35 = vpack.c.bf16 %v184_v28, %v184_v28 }
  0x89   :  { %v426_v36 = vunpack.i.h.bf16 %v424_v25  ;;  %v425_v37 = vunpack.i.l.bf16 %v424_v25 }
  0x8a   :  { %v191_v38 = vsel %vm181_vm4, %v416_v30, %v415_v31  ;;  %v190_v39 = vsel %vm181_vm4, %v415_v31, %v416_v30  ;;  %342 = vmatprep.subr.msk.bf16.mxu0 %vm225_vm7, %v212_v34  ;;  %v227_v42 = vsel %vm225_vm7, %v211_v35, 0  ;;  %vm543_vm4 = vmmov 1  }
  0x8b   :  { %v434_v40 = vpop.permute.xlu1 %433  ;;  %v429_v41 = vpop.permute.xlu0 %428  ;;  %v193_v43 = vsel %vm176_vm6, %v191_v38, 0.0  ;;  %v192_v44 = vsel %vm175_vm5, %v190_v39, 0.0  ;;  %245 = vmatpush1.bf16.msra.mxu0 %v227_v42  ;;  %v155_v55 = vsel %vm145_vm8, %v426_v36, %v425_v37  ;;  %vm719_vm5 = vmpackc.low %vm613_vm3, %vm543_vm4  ;;  %v154_v21 = vsel %vm145_vm8, %v425_v37, %v426_v36 }
  0x8c   :  { %v436_v46 = vunpack.i.h.bf16 %v434_v40  ;;  %v435_v47 = vunpack.i.l.bf16 %v434_v40  ;;  %v431_v48 = vunpack.i.h.bf16 %v429_v41  ;;  %v430_v49 = vunpack.i.l.bf16 %v429_v41 }
  0x8d   :  { %v214_v52 = vpack.c.bf16 %v193_v43, %v193_v43  ;;  %v213_v53 = vpack.c.bf16 %v192_v44, %v192_v44  ;;  %vm742_vm6 = vcmp.ge.s32.totalorder %v35_v12, 1  ;;  %vm92_vm8 = vcmp.lt.s32.totalorder %v588_v9, 15 }
  0x8e   :  { %v172_v56 = vsel %vm162_vm10, %v436_v46, %v435_v47  ;;  %v163_v57 = vsel %vm162_vm10, %v430_v49, %v431_v48  ;;  %v164_v58 = vsel %vm162_vm10, %v431_v48, %v430_v49  ;;  %v171_v8 = vsel %vm162_vm10, %v435_v47, %v436_v46  ;;  %vm86_vm12 = vmand %vm742_vm6, %vm603_vm1 }
  0x8f   :  { %v370_v59 = vpack.c.bf16 %v172_v56, %v155_v55  ;;  %v344_v60 = vpack.c.bf16 %v164_v58, %v147_v51  ;;  %v347_v61 = vpack.c.bf16 %v163_v57, %v146_v50  ;;  %368 = vmatprep.subr.msk.bf16.mxu1 %vm225_vm7, %v214_v52  ;;  %v444_v62 = vpop.permute.xlu1 %443  ;;  %v439_v63 = vpop.permute.xlu0 %438  ;;  %v233_v11 = vsel %vm225_vm7, %v213_v53, 0  ;;  %vm751_vm7 = vmpackc.low %vm603_vm1, %vm543_vm4 }
  0x90   :  { %v446_v3 = vunpack.i.h.bf16 %v444_v62  ;;  %v445_v5 = vunpack.i.l.bf16 %v444_v62  ;;  %v441_v6 = vunpack.i.h.bf16 %v439_v63  ;;  %v440_v7 = vunpack.i.l.bf16 %v439_v63  ;;  %286 = vmatpush1.bf16.msra.mxu1 %v233_v11  ;;  %vm358_vm15 = vmpackc.low %vm667_vm13, %vm86_vm12 }
  0x91   :  { %345 = vmatprep.subr.msk.bf16.mxu0 %vm682_vm14, %v344_v60  ;;  %371 = vmatprep.subr.msk.bf16.mxu1 %vm682_vm14, %v370_v59  ;;  %v373_v27 = vpack.c.bf16 %v171_v8, %v154_v21  ;;  %vm109_vm10 = vcmp.lt.s32.totalorder %v588_v9, 1  ;;  %vm51_vm1 = vmand %vm731_vm0, %vm641_vm9 }
  0x92   :  { %v136_v17 = vsel %vm126_vm11, %v446_v3, %v445_v5  ;;  %v127_v19 = vsel %vm126_vm11, %v440_v7, %v441_v6  ;;  %v128_v20 = vsel %vm126_vm11, %v441_v6, %v440_v7  ;;  %v135_v28 = vsel %vm126_vm11, %v445_v5, %v446_v3  ;;  %348 = vmatpush1.bf16.msk.msra.mxu0 %vm706_vm2, %v347_v61  ;;  %vm87_vm11 = vmand %vm731_vm0, %vm613_vm3 }
  0x93   :  { %v376_v22 = vpack.c.bf16 %v136_v17, %v579_v4  ;;  %v350_v23 = vpack.c.bf16 %v128_v20, %v573_v1  ;;  %v454_v24 = vpop.permute.xlu1 %453  ;;  %v449_v25 = vpop.permute.xlu0 %448  ;;  %v353_v30 = vpack.c.bf16 %v127_v19, %v571_v0  ;;  %v379_v12 = vpack.c.bf16 %v135_v28, %v575_v2  ;;  %vm355_vm14 = vmpackc.low %vm641_vm9, %vm87_vm11 }
  0x94   :  { %v456_v4 = vunpack.i.h.bf16 %v454_v24  ;;  %v455_v10 = vunpack.i.l.bf16 %v454_v24  ;;  %v451_v14 = vunpack.i.h.bf16 %v449_v25  ;;  %v450_v31 = vunpack.i.l.bf16 %v449_v25  ;;  %374 = vmatpush1.bf16.msk.msra.mxu1 %vm706_vm2, %v373_v27  ;;  %vm50_vm4 = vmand %vm742_vm6, %vm667_vm13 }
  0x95   :  { %351 = vmatprep.subr.msk.bf16.mxu0 %vm719_vm5, %v350_v23  ;;  %377 = vmatprep.subr.msk.bf16.mxu1 %vm719_vm5, %v376_v22  ;;  %vm56_vm3 = vcmp.lt.s32.totalorder %v588_v9, 17  ;;  %vm73_vm2 = vcmp.lt.s32.totalorder %v588_v9, 16  ;;  %vm361_vm9 = vmpackc.low %vm731_vm0, %vm51_vm1  ;;  %vm221_vm5 = vcmask 588800  }
  0x96   :  { %354 = vmatpush1.bf16.msk.msra.mxu0 %vm751_vm7, %v353_v30  ;;  %v101_v2 = vsel %vm92_vm8, %v455_v10, %v456_v4  ;;  %v102_v38 = vsel %vm92_vm8, %v456_v4, %v455_v10  ;;  %v93_v39 = vsel %vm92_vm8, %v450_v31, %v451_v14  ;;  %v94_v40 = vsel %vm92_vm8, %v451_v14, %v450_v31  ;;  %vm364_vm13 = vmpackc.low %vm742_vm6, %vm50_vm4 }
  0x97   :  { %v464_v32 = vpop.permute.xlu1 %463  ;;  %v459_v33 = vpop.permute.xlu0 %458 }
  0x98   :  { %v466_v34 = vunpack.i.h.bf16 %v464_v32  ;;  %v465_v35 = vunpack.i.l.bf16 %v464_v32  ;;  %v461_v36 = vunpack.i.h.bf16 %v459_v33  ;;  %v460_v37 = vunpack.i.l.bf16 %v459_v33  ;;  %380 = vmatpush1.bf16.msk.msra.mxu1 %vm751_vm7, %v379_v12 }
  0x9a   :  { %v118_v41 = vsel %vm109_vm10, %v465_v35, %v466_v34  ;;  %v119_v42 = vsel %vm109_vm10, %v466_v34, %v465_v35  ;;  %v110_v43 = vsel %vm109_vm10, %v460_v37, %v461_v36  ;;  %v111_v44 = vsel %vm109_vm10, %v461_v36, %v460_v37 }
  0x9b   :  { %v382_v46 = vpack.c.bf16 %v118_v41, %v101_v2  ;;  %v385_v47 = vpack.c.bf16 %v119_v42, %v102_v38  ;;  %v356_v48 = vpack.c.bf16 %v110_v43, %v93_v39  ;;  %v359_v49 = vpack.c.bf16 %v111_v44, %v94_v40  ;;  %v474_v50 = vpop.permute.xlu1 %473  ;;  %v469_v51 = vpop.permute.xlu0 %468 }
  0x9c   :  { %v476_v52 = vunpack.i.h.bf16 %v474_v50  ;;  %v475_v18 = vunpack.i.l.bf16 %v474_v50  ;;  %v471_v53 = vunpack.i.h.bf16 %v469_v51  ;;  %v470_v54 = vunpack.i.l.bf16 %v469_v51 }
  0x9d   :  { %357 = vmatprep.subr.msk.bf16.mxu0 %vm355_vm14, %v356_v48  ;;  %383 = vmatprep.subr.msk.bf16.mxu1 %vm355_vm14, %v382_v46 }
  0x9e   :  { %360 = vmatpush1.bf16.msk.msra.mxu0 %vm358_vm15, %v359_v49  ;;  %386 = vmatpush1.bf16.msk.msra.mxu1 %vm358_vm15, %v385_v47  ;;  %v65_v60 = vsel %vm56_vm3, %v475_v18, %v476_v52  ;;  %v66_v61 = vsel %vm56_vm3, %v476_v52, %v475_v18  ;;  %v57_v62 = vsel %vm56_vm3, %v470_v54, %v471_v53 }
  0x9f   :  { %v484_v55 = vpop.permute.xlu1 %483  ;;  %v479_v56 = vpop.permute.xlu0 %478  ;;  %v58_v63 = vsel %vm56_vm3, %v471_v53, %v470_v54 }
  0xa0   :  { %v486_v16 = vunpack.i.h.bf16 %v484_v55  ;;  %v485_v57 = vunpack.i.l.bf16 %v484_v55  ;;  %v481_v58 = vunpack.i.h.bf16 %v479_v56  ;;  %v480_v59 = vunpack.i.l.bf16 %v479_v56 }
  0xa2   :  { %v82_v3 = vsel %vm73_vm2, %v485_v57, %v486_v16  ;;  %v83_v29 = vsel %vm73_vm2, %v486_v16, %v485_v57  ;;  %v74_v5 = vsel %vm73_vm2, %v480_v59, %v481_v58  ;;  %v75_v6 = vsel %vm73_vm2, %v481_v58, %v480_v59 }
  0xa3   :  { %v388_v45 = vpack.c.bf16 %v82_v3, %v65_v60  ;;  %v391_v7 = vpack.c.bf16 %v83_v29, %v66_v61  ;;  %v362_v8 = vpack.c.bf16 %v74_v5, %v57_v62  ;;  %v365_v11 = vpack.c.bf16 %v75_v6, %v58_v63 }
  0xa5   :  { %363 = vmatprep.subr.msk.bf16.mxu0 %vm361_vm9, %v362_v8  ;;  %389 = vmatprep.subr.msk.bf16.mxu1 %vm361_vm9, %v388_v45 }
  0xa6   :  { %366 = vmatpush1.bf16.msk.msra.mxu0 %vm364_vm13, %v365_v11  ;;  %392 = vmatpush1.bf16.msk.msra.mxu1 %vm364_vm13, %v391_v7 }
  0xa9   :  { %367 = vmatmul.mubr.msk.bf16.vlgmr.msra.gmra.mxu0 %vm221_vm5, %v194_v13  ;;  %393 = vmatmul.mubr.msk.bf16.vlgmr.msra.gmra.mxu1 %vm221_vm5, %v194_v13 }
  0xac   :  { %v219_v9 = vpop.permute.xlu0 %218 }
 0x169   :  { %v272_v17 = vpop.f32.mrf.mxu0  ;;  %v313_v19 = vpop.f32.mrf.mxu1 }
 0x16a   :  { %v273_v20 = vadd.f32 %v272_v17, %v219_v9  ;;  %v314_v15 = vadd.f32 %v313_v19, %v219_v9 }
 0x16b   :  { %v274_v21 = vpop.f32.mrf.mxu0  ;;  %v315_v22 = vpop.f32.mrf.mxu1 }
 0x16c   :  { %320 = vst [vmem:[#allocation5] sm:$0xff] %v273_v20  ;;  %323 = vst [vmem:[#allocation5 + $0x10] sm:$0xff] %v314_v15  ;;  %v275_v23 = vadd.f32 %v274_v21, %v219_v9  ;;  %v316_v24 = vadd.f32 %v315_v22, %v219_v9 }
 0x16d   :  { %v276_v25 = vpop.f32.mrf.mxu0  ;;  %v317_v26 = vpop.f32.mrf.mxu1 }
 0x16e   :  { %321 = vst [vmem:[#allocation5 + $0x8] sm:$0xff] %v275_v23  ;;  %324 = vst [vmem:[#allocation5 + $0x18] sm:$0xff] %v316_v24 }
 0x16f   :  { %v277_v27 = vpop.f32.mrf.mxu0  ;;  %v318_v28 = vpop.f32.mrf.mxu1 }
 0x170   :  { %519 = shalt.err (!%p516_p9)
}
 0x171   :  { %336 = dma.vmem_to_hbm [thread:$0]  %s331_s29, 512, %s838_s3, [#allocation4], %s533_s15, %s533_s15, %s534_s16  }
 0x172   :  { %530 = dma.done.wait [#allocation4], 512  }
 0x173   :  { %531 = vsyncadd [#allocation4], 4294966784 }
 0x174   :  { %340 = vsyncpa [#allocation3], 1 }
 0x175   :  { %341 = vsyncpa [#allocation4], 1 }

</bundles_post_ra>
